<compile_context>
chip_gen: v5e
topology: v5e:2x2
jax: 0.10.0
libtpu: 0.0.40
codegen_flags: <defaults>
</compile_context>

<pallas_src>
import math

import jax
import jax.numpy as jnp
from jax import lax
from jax.experimental import pallas as pl
from jax.experimental.pallas import tpu as pltpu

# Model dims (small, consistent with the module's forward).
D_MODEL = 32
D_FF = 128

SUBLANE = 8  # f32 sublane granularity (second-to-last dim)


def _round_up(n, m):
    return ((n + m - 1) // m) * m


def _gelu(x):
    # Exact erf-based gelu, matching the PyTorch reference.
    return x * 0.5 * (1.0 + lax.erf(x / math.sqrt(2.0)))


def _make_ffn_kernel(mm_dtype):
    def ffn_kernel(x_ref, w1_ref, b1_ref, w2_ref, b2_ref, o_ref):
        # x_ref: (tm, d_model), w1_ref: (d_model, d_ff), b1_ref: (1, d_ff)
        # w2_ref: (d_ff, d_model), b2_ref: (1, d_model), o_ref: (tm, d_model)
        x = x_ref[...].astype(mm_dtype)
        # fc1 (MXU, f32 accumulate) + bias + exact gelu in f32.
        h = jnp.dot(x, w1_ref[...], preferred_element_type=jnp.float32)
        h = h + b1_ref[...]
        g = _gelu(h)
        # fc2 (MXU, f32 accumulate) + bias.
        y = jnp.dot(g.astype(mm_dtype), w2_ref[...],
                    preferred_element_type=jnp.float32)
        y = y + b2_ref[...]
        o_ref[...] = y.astype(o_ref.dtype)

    return ffn_kernel


def poswise_ffn(x, w1, b1, w2, b2, *, tm=1024, matmul_dtype=None):
    """BERT position-wise FFN: fc2(gelu(fc1(x))).

    x:  [batch, seq, d_model]
    w1: [d_model, d_ff]   ((in, out), i.e. PyTorch fc1.weight.T)
    b1: [d_ff]
    w2: [d_ff, d_model]
    b2: [d_model]
    matmul_dtype: optional operand dtype for the matmuls (e.g. jnp.bfloat16
                  on v5e/v6e/v7x); accumulation stays f32 either way.
    """
    B, S, d_model = x.shape
    d_ff = w1.shape[1]
    M = B * S

    out_dtype = x.dtype
    mm_dtype = x.dtype if matmul_dtype is None else matmul_dtype

    # Token tile: multiple of 8 (f32 sublanes), capped at the token count.
    tm_eff = min(_round_up(tm, SUBLANE), _round_up(M, SUBLANE))
    # Ensure >= 2 grid steps when possible so both v7x TensorCores get work.
    if pl.cdiv(M, tm_eff) < 2 and M > SUBLANE:
        tm_eff = max(SUBLANE, _round_up(pl.cdiv(M, 2), SUBLANE))
    grid = (pl.cdiv(M, tm_eff),)

    # Free reshape (contiguous) — no extra HBM pass.
    x2d = x.reshape(M, d_model)

    # Weights are tiny: cast once in the wrapper; biases stay f32 for the
    # f32 bias-add / gelu path inside the kernel.
    w1k = w1.astype(mm_dtype)
    w2k = w2.astype(mm_dtype)
    b1k = b1.reshape(1, d_ff).astype(jnp.float32)
    b2k = b2.reshape(1, d_model).astype(jnp.float32)

    x_bytes = M * d_model * jnp.dtype(x.dtype).itemsize
    out_bytes = M * d_model * jnp.dtype(out_dtype).itemsize
    w_bytes = (w1k.size + w2k.size) * jnp.dtype(mm_dtype).itemsize
    b_bytes = (b1k.size + b2k.size) * 4
    cost = pl.CostEstimate(
        flops=4 * M * d_model * d_ff,      # two matmuls
        transcendentals=M * d_ff,          # erf per hidden activation
        bytes_accessed=x_bytes + out_bytes + w_bytes + b_bytes,
    )

    out2d = pl.pallas_call(
        _make_ffn_kernel(mm_dtype),
        out_shape=jax.ShapeDtypeStruct((M, d_model), out_dtype),
        grid_spec=pltpu.PrefetchScalarGridSpec(
            num_scalar_prefetch=0,
            grid=grid,
            in_specs=[
                # Token slab: tiled over the grid; last dim equals the full
                # array dim so the (8,128) rule is satisfied without padding.
                pl.BlockSpec((tm_eff, d_model), lambda i: (i, 0)),
                # Weights / biases: constant index_map -> DMA'd once, stay
                # resident in VMEM across all grid steps.
                pl.BlockSpec((d_model, d_ff), lambda i: (0, 0)),
                pl.BlockSpec((1, d_ff), lambda i: (0, 0)),
                pl.BlockSpec((d_ff, d_model), lambda i: (0, 0)),
                pl.BlockSpec((1, d_model), lambda i: (0, 0)),
            ],
            out_specs=pl.BlockSpec((tm_eff, d_model), lambda i: (i, 0)),
        ),
        compiler_params=pltpu.CompilerParams(
            dimension_semantics=("parallel",),   # megacore-shardable on v7x
        ),
        cost_estimate=cost,
    )(x2d, w1k, b1k, w2k, b2k)

    return out2d.reshape(B, S, d_model)


def reference_ffn(x, w1, b1, w2, b2):
    h = jnp.einsum("bsd,df->bsf", x, w1) + b1
    g = _gelu(h)
    return jnp.einsum("bsf,fd->bsd", g, w2) + b2


if __name__ == "__main__":
    key = jax.random.PRNGKey(0)
    k_x, k_w1, k_b1, k_w2, k_b2 = jax.random.split(key, 5)

    batch, seq = 2, 8
    x = jax.random.normal(k_x, (batch, seq, D_MODEL), dtype=jnp.float32)

    # Deterministic parameter init (PyTorch Linear stores weight as (out, in);
    # we keep (in, out) for the kernel — mathematically x @ W^T == x @ W_io).
    bound1 = 1.0 / math.sqrt(D_MODEL)
    bound2 = 1.0 / math.sqrt(D_FF)
    w1 = jax.random.uniform(k_w1, (D_MODEL, D_FF), jnp.float32, -bound1, bound1)
    b1 = jax.random.uniform(k_b1, (D_FF,), jnp.float32, -bound1, bound1)
    w2 = jax.random.uniform(k_w2, (D_FF, D_MODEL), jnp.float32, -bound2, bound2)
    b2 = jax.random.uniform(k_b2, (D_MODEL,), jnp.float32, -bound2, bound2)

    ref = reference_ffn(x, w1, b1, w2, b2)

    # f32 operand path (default): tight tolerance vs f32 reference.
    out = poswise_ffn(x, w1, b1, w2, b2)
    out = jax.block_until_ready(out)
    assert out.shape == (batch, seq, D_MODEL)
    assert jnp.allclose(out, ref, atol=1e-5, rtol=1e-5), "f32 path mismatch"

    # bf16 operand path (v5e/v6e/v7x MXU fast path): looser tolerance.
    out_bf16 = poswise_ffn(x, w1, b1, w2, b2, matmul_dtype=jnp.bfloat16)
    out_bf16 = jax.block_until_ready(out_bf16)
    assert jnp.allclose(out_bf16, ref, atol=3e-2, rtol=3e-2), "bf16 path mismatch"

    print("KERNEL_OK")
</pallas_src>

<mosaic_0001>
module attributes {stable_mosaic.version = 11 : i64} {
  func.func @ffn_kernel(%arg0: i32, %arg1: memref<8x32xf32, #tpu.memory_space<vmem>>, %arg2: memref<32x128xf32, #tpu.memory_space<vmem>>, %arg3: memref<1x128xf32, #tpu.memory_space<vmem>>, %arg4: memref<128x32xf32, #tpu.memory_space<vmem>>, %arg5: memref<1x32xf32, #tpu.memory_space<vmem>>, %arg6: memref<8x32xf32, #tpu.memory_space<vmem>>) attributes {dimension_semantics = [#tpu.dimension_semantics<parallel>], iteration_bounds = array<i64: 2>, scalar_prefetch = 0 : i64, scratch_operands = 0 : i64, tpu.core_type = #tpu.core_type<tc>, window_params = [{transform_indices = @transform_0, window_bounds = array<i64: 8, 32>}, {pipeline_mode = #tpu.pipeline_mode<synchronous>, transform_indices = @transform_1, window_bounds = array<i64: 32, 128>}, {pipeline_mode = #tpu.pipeline_mode<synchronous>, transform_indices = @transform_2, window_bounds = array<i64: 1, 128>}, {pipeline_mode = #tpu.pipeline_mode<synchronous>, transform_indices = @transform_3, window_bounds = array<i64: 128, 32>}, {pipeline_mode = #tpu.pipeline_mode<synchronous>, transform_indices = @transform_4, window_bounds = array<i64: 1, 32>}, {transform_indices = @transform_5, window_bounds = array<i64: 8, 32>}]} {
    %c0 = arith.constant 0 : index
    %c0_0 = arith.constant 0 : index
    %0 = vector.load %arg1[%c0, %c0_0] : memref<8x32xf32, #tpu.memory_space<vmem>>, vector<8x32xf32>
    %c0_1 = arith.constant 0 : index
    %c0_2 = arith.constant 0 : index
    %1 = vector.load %arg2[%c0_1, %c0_2] : memref<32x128xf32, #tpu.memory_space<vmem>>, vector<32x128xf32>
    %cst = arith.constant dense<0.000000e+00> : vector<8x128xf32>
    %2 = tpu.matmul %0, %1, %cst {dimension_numbers = #tpu.dot_dimension_numbers<[1], [0], [0], [1], [0, 0, 1, 1], [], []>} : vector<8x32xf32>, vector<32x128xf32>, vector<8x128xf32> -> vector<8x128xf32>
    %c0_3 = arith.constant 0 : index
    %c0_4 = arith.constant 0 : index
    %3 = vector.load %arg3[%c0_3, %c0_4] : memref<1x128xf32, #tpu.memory_space<vmem>>, vector<1x128xf32>
    %4 = vector.broadcast %3 : vector<1x128xf32> to vector<8x128xf32>
    %5 = arith.addf %2, %4 : vector<8x128xf32>
    %cst_5 = arith.constant 5.000000e-01 : f32
    %6 = vector.broadcast %cst_5 : f32 to vector<8x128xf32>
    %7 = arith.mulf %5, %6 : vector<8x128xf32>
    %cst_6 = arith.constant 1.41421354 : f32
    %8 = vector.broadcast %cst_6 : f32 to vector<8x128xf32>
    %9 = arith.divf %5, %8 : vector<8x128xf32>
    %10 = math.erf %9 : vector<8x128xf32>
    %cst_7 = arith.constant 1.000000e+00 : f32
    %11 = vector.broadcast %cst_7 : f32 to vector<8x128xf32>
    %12 = arith.addf %11, %10 : vector<8x128xf32>
    %13 = arith.mulf %7, %12 : vector<8x128xf32>
    %c0_8 = arith.constant 0 : index
    %c0_9 = arith.constant 0 : index
    %14 = vector.load %arg4[%c0_8, %c0_9] : memref<128x32xf32, #tpu.memory_space<vmem>>, vector<128x32xf32>
    %cst_10 = arith.constant dense<0.000000e+00> : vector<8x32xf32>
    %15 = tpu.matmul %13, %14, %cst_10 {dimension_numbers = #tpu.dot_dimension_numbers<[1], [0], [0], [1], [0, 0, 1, 1], [], []>} : vector<8x128xf32>, vector<128x32xf32>, vector<8x32xf32> -> vector<8x32xf32>
    %c0_11 = arith.constant 0 : index
    %c0_12 = arith.constant 0 : index
    %16 = vector.load %arg5[%c0_11, %c0_12] : memref<1x32xf32, #tpu.memory_space<vmem>>, vector<1x32xf32>
    %17 = vector.broadcast %16 : vector<1x32xf32> to vector<8x32xf32>
    %18 = arith.addf %15, %17 : vector<8x32xf32>
    %c0_13 = arith.constant 0 : index
    %c0_14 = arith.constant 0 : index
    %19 = vector.load %arg6[%c0_13, %c0_14] : memref<8x32xf32, #tpu.memory_space<vmem>>, vector<8x32xf32>
    tpu.vector_store %arg6[%c0_13, %c0_14], %18 {strides = array<i32>} : memref<8x32xf32, #tpu.memory_space<vmem>>, vector<8x32xf32>,
    return
  }
  func.func @transform_0(%arg0: i32) -> (i32, i32) {
    %c0_i32 = arith.constant 0 : i32
    %c0_i32_0 = arith.constant 0 : i32
    return %arg0, %c0_i32 : i32, i32
  }
  func.func @transform_1(%arg0: i32) -> (i32, i32) {
    %c0_i32 = arith.constant 0 : i32
    %c0_i32_0 = arith.constant 0 : i32
    %c0_i32_1 = arith.constant 0 : i32
    return %c0_i32, %c0_i32_0 : i32, i32
  }
  func.func @transform_2(%arg0: i32) -> (i32, i32) {
    %c0_i32 = arith.constant 0 : i32
    %c0_i32_0 = arith.constant 0 : i32
    %c0_i32_1 = arith.constant 0 : i32
    return %c0_i32, %c0_i32_0 : i32, i32
  }
  func.func @transform_3(%arg0: i32) -> (i32, i32) {
    %c0_i32 = arith.constant 0 : i32
    %c0_i32_0 = arith.constant 0 : i32
    %c0_i32_1 = arith.constant 0 : i32
    return %c0_i32, %c0_i32_0 : i32, i32
  }
  func.func @transform_4(%arg0: i32) -> (i32, i32) {
    %c0_i32 = arith.constant 0 : i32
    %c0_i32_0 = arith.constant 0 : i32
    %c0_i32_1 = arith.constant 0 : i32
    return %c0_i32, %c0_i32_0 : i32, i32
  }
  func.func @transform_5(%arg0: i32) -> (i32, i32) {
    %c0_i32 = arith.constant 0 : i32
    %c0_i32_0 = arith.constant 0 : i32
    return %arg0, %c0_i32 : i32, i32
  }
}

</mosaic_0001>

<bundles_post_ra>
// kernel: tpu_custom_call.1
= control target key start
LH: loop header
LB: loop body
LE: loop exit
PB: predicated region body
PF: predicated region fallthrough
CT: control target
= control target key end

     0   :  { %10 = vsyncpa [#allocation3], 0  ;;  %s726_s0 = inlined_call_operand.vmem [shape: f32[16,32], index: 0, kind: input, shape index: {}]   ;;  %s727_s1 = inlined_call_operand.vmem [shape: f32[32,128], index: 1, kind: input, shape index: {}]   ;;  %s728_s2 = inlined_call_operand.vmem [shape: f32[1,128], index: 2, kind: input, shape index: {}]   ;;  %s729_s3 = inlined_call_operand.vmem [shape: f32[128,32], index: 3, kind: input, shape index: {}]   ;;  %s730_s4 = inlined_call_operand.vmem [shape: f32[1,32], index: 4, kind: input, shape index: {}]   ;;  %s731_s5 = inlined_call_operand.hbm [shape: f32[16,32], index: 5, kind: output, shape index: {}]  }
   0x1   :  { %12 = vsyncpa [#allocation3 + $0x1], 0  ;;  %s573_s18 = smov 0   ;;  %s575_s19 = smov 0  }
   0x2   :  { %s577_s20 = smov 0   ;;  %s579_s21 = smov 0  }
   0x3 LB: > { %s594_s22 = sadd.s32 4294967295, %s540_s21   ;;  %s420_s23 = sadd.s32 4294967294, %s540_s21   ;;  %s540_s21 = sphi %s579_s21, %s737_s21   ;;  %s536_s20 = sphi %s577_s20, %s736_s20   ;;  %s532_s19 = sphi %s575_s19, %s735_s19   ;;  %s528_s18 = sphi %s573_s18, %s734_s18  }
   0x4   : > { %s598_s24 = sadd.s32 1, %s540_s21   ;;  %s135_s25 = sadd.s32 1, %s536_s20 }
   0x5   : > { %s132_s26 = ssub.s32 %s540_s21, %s598_s24  ;;  %p145_p0 = scmp.ne.s32.totalorder %s536_s20, %s532_s19 }
   0x6   : > { %p133_p1 = scmp.eq.s32.totalorder %s132_s26, 0  ;;  %p146_p2 = scmp.eq.s32.totalorder %s594_s22, 1 }
   0x7   : > { %p151_p3 = scmp.ne.s32.totalorder %s532_s19, %s528_s18  ;;  %p152_p4 = scmp.eq.s32.totalorder %s420_s23, 1 }
   0x8   : > { %s609_s27 = scalar_select %p133_p1, %s536_s20, %s135_s25  }
   0x9   : > { %p611_p5 = por %p146_p2, %p145_p0  ;;  %p615_p6 = por %p152_p4, %p151_p3 }
   0xa   : > { %p423_p7 = scmp.ge.s32.totalorder %s540_s21, 1  ;;  %p189_p8 = scmp.lt.s32.totalorder %s540_s21, 3 }
   0xc   : > { %p190_p9 = pnand %p423_p7, %p189_p8 }
   0xd   : > { %p216_p10 = scmp.lt.s32.totalorder (!%p190_p9), %s594_s22, 1  ;;  %s213_s26 = sand.u32 (!%p190_p9), 1, %s532_s19  }
   0xe   : > { %193 = sbr.rel (%p190_p9) target bundleno = 337 (0x151), region = 40  ;;  %s424_s30 = sshll.u32 (!%p190_p9), %s213_s26, 3 }
   0xf   : > { %s429_s6 = sshll.u32 (!%p190_p9), %s594_s22, 3  ;;  %s215_s12 = scalar_lea.vmem (!%p190_p9), [#allocation2], %s424_s30 }
  0x10   : > { %s356_s9 = scalar_lea.hbm (!%p190_p9), %s731_s5, %s429_s6  ;;  %s358_s13 = sshll.u32 (!%p190_p9), %s215_s12, 4  ;;  %s359_s13 = int_to_ptr.vmem [resolvable:$true] %s358_s13 }
  0x11   : > { %s346_s15 = scalar_lea.sflag (!%p190_p9), [#allocation3], %s213_s26  ;;  %s498_s25 = scalar_lea.hbm (!%p190_p9), %s731_s5, 16 }
  0x13   : > { %v224_v0 = vld [vmem:[%s727_s1 + $0x18] sm:$0xff]  ;;  %v223_v1 = vld [vmem:[%s727_s1 + $0x10] sm:$0xff]  ;;  %v222_v2 = vld [vmem:[%s727_s1 + $0x8] sm:$0xff]  ;;  %s217_s11 = scalar_select %p216_p10, %s594_s22, 1  ;;  %vm229_vm0 = vcmask 261120  }
  0x14   : > { %245 = vmatpush.msra.mxu0 %v224_v0  ;;  %v221_v3 = vld [vmem:[%s727_s1] sm:$0xff]  ;;  %v542_v5 = vmov 1.4142135   ;;  %v319_v9 = vld [vmem:[%s729_s3 + $0x78] sm:$0xff]  ;;  %v318_v11 = vld [vmem:[%s729_s3 + $0x70] sm:$0xff] }
  0x15   : > { %s425_s14 = sshll.u32 %s217_s11, 3  ;;  %474 = vrcp.f32 %v542_v5  ;;  %324 = vmatpush.msra.mxu1 %v319_v9  ;;  %v317_v12 = vld [vmem:[%s729_s3 + $0x68] sm:$0xff]  ;;  %v316_v14 = vld [vmem:[%s729_s3 + $0x60] sm:$0xff]  ;;  %v315_v16 = vld [vmem:[%s729_s3 + $0x58] sm:$0xff] }
  0x16   : > { %246 = vmatpush.msra.mxu0 %v223_v1  ;;  %s219_s17 = scalar_lea.vmem %s726_s0, %s425_s14  ;;  %v472_v15 = vld [vmem:[%s728_s2] ss:$0 sm:$0xff]  ;;  %v314_v17 = vld [vmem:[%s729_s3 + $0x50] sm:$0xff]  ;;  %v313_v20 = vld [vmem:[%s729_s3 + $0x48] sm:$0xff]  ;;  %s360_s14 = sshll.u32 %s356_s9, 4  ;;  %s361_s14 = int_to_ptr.hbm [resolvable:$true] %s360_s14 }
  0x17   : > { %v220_v4 = vld [vmem:[%s219_s17] sm:$0xff]  ;;  %325 = vmatpush.msra.mxu1 %v318_v11  ;;  %v311_v24 = vld [vmem:[%s729_s3 + $0x38] sm:$0xff]  ;;  %v310_v26 = vld [vmem:[%s729_s3 + $0x30] sm:$0xff]  ;;  %s492_s22 = sshra.s32 %s361_s14, 4  ;;  %s493_s22 = int_to_ptr.hbm [resolvable:$true] %s492_s22 }
  0x18   : > { %247 = vmatpush.msra.mxu0 %v222_v2  ;;  %v312_v22 = vld [vmem:[%s729_s3 + $0x40] sm:$0xff]  ;;  %v309_v28 = vld [vmem:[%s729_s3 + $0x28] sm:$0xff]  ;;  %v307_v34 = vld [vmem:[%s729_s3 + $0x18] sm:$0xff]  ;;  %s494_s16 = scalar_lea.hbm %s493_s22, 8  ;;  %p499_p0 = scmp.lt.s32.totalorder %s493_s22, %s731_s5 }
  0x19   : > { %326 = vmatpush.msra.mxu1 %v317_v12  ;;  %v308_v31 = vld [vmem:[%s729_s3 + $0x20] sm:$0xff]  ;;  %v306_v37 = vld [vmem:[%s729_s3 + $0x10] sm:$0xff]  ;;  %v305_v40 = vld [vmem:[%s729_s3 + $0x8] sm:$0xff]  ;;  %p495_p11 = scmp.ne.s32.totalorder %s493_s22, %s494_s16  ;;  %p500_p1 = scmp.lt.s32.totalorder %s498_s25, %s494_s16 }
  0x1a   : > { %248 = vmatpush.msra.mxu0 %v221_v3  ;;  %v304_v42 = vld [vmem:[%s729_s3] sm:$0xff] }
  0x1b   : > { %426 = vmatmul.msk.f32.vlgmr.msra.gmra.mxu0 %vm229_vm0, %v220_v4  ;;  %v475_v6 = vpop.eup %474  ;;  %327 = vmatpush.msra.mxu1 %v316_v14  ;;  %p496_p12 = pnand %p495_p11, %p611_p5  ;;  %p501_p2 = por %p500_p1, %p499_p0 }
  0x1c   : > { %v255_v7 = vmul.f32 1.4142135, %v475_v6  ;;  %vm259_vm1 = vweird.f32 %v475_v6 }
  0x1d   : > { %328 = vmatpush.msra.mxu1 %v315_v16  ;;  %p497_p13 = pneg %p496_p12 }
  0x1e   : > { %v256_v8 = vsub.f32 1.0, %v255_v7 }
  0x1f   : > { %329 = vmatpush.msra.mxu1 %v314_v17  ;;  %p502_p3 = pnand %p501_p2, %p497_p13 }
  0x20   : > { %v257_v10 = vmul.f32 %v475_v6, %v256_v8 }
  0x21   : > { %330 = vmatpush.msra.mxu1 %v313_v20 }
  0x22   : > { %v258_v13 = vadd.f32 %v475_v6, %v257_v10 }
  0x23   : > { %331 = vmatpush.msra.mxu1 %v312_v22 }
  0x24   : > { %v260_v19 = vsel %vm259_vm1, %v475_v6, %v258_v13  ;;  %v473_v6 = vld [vmem:[%s730_s4] ss:$0 sm:$0xff] }
  0x25   : > { %332 = vmatpush.msra.mxu1 %v311_v24 }
  0x27   : > { %333 = vmatpush.msra.mxu1 %v310_v26 }
  0x29   : > { %334 = vmatpush.msra.mxu1 %v309_v28 }
  0x2b   : > { %335 = vmatpush.msra.mxu1 %v308_v31 }
  0x2d   : > { %336 = vmatpush.msra.mxu1 %v307_v34 }
  0x2f   : > { %337 = vmatpush.msra.mxu1 %v306_v37 }
  0x31   : > { %338 = vmatpush.msra.mxu1 %v305_v40 }
  0x33   : > { %339 = vmatpush.msra.mxu1 %v304_v42 }
  0x98   : > { %v250_v18 = vpop.f32.mrf.mxu0 }
  0x99   : > { %v251_v21 = vadd.f32 %v472_v15, %v250_v18 }
  0x9b   : > { %v261_v23 = vmul.f32 %v260_v19, %v251_v21  ;;  %v253_v3 = vmul.f32 0.5, %v251_v21 }
  0x9d   : > { %v262_v25 = vmul.f32 %v261_v23, %v261_v23 }
  0x9f   : > { %v263_v27 = vmin.f32 %v262_v25, 16.0 }
  0xa1   : > { %v264_v29 = vmul.f32 2.1237322e-06, %v263_v27  ;;  %v275_v30 = vmul.f32 3.8918573e-05, %v263_v27 }
  0xa3   : > { %v265_v32 = vadd.f32 0.00028619796, %v264_v29  ;;  %v276_v33 = vadd.f32 0.001143296, %v275_v30 }
  0xa5   : > { %v266_v35 = vmul.f32 %v265_v32, %v263_v27  ;;  %v277_v36 = vmul.f32 %v276_v33, %v263_v27 }
  0xa7   : > { %v278_v38 = vadd.f32 0.014752088, %v277_v36  ;;  %v267_v39 = vadd.f32 0.0036580483, %v266_v35 }
  0xa9   : > { %v279_v41 = vmul.f32 %v278_v38, %v263_v27  ;;  %v268_v44 = vmul.f32 %v267_v39, %v263_v27 }
  0xab   : > { %v280_v43 = vadd.f32 0.112945676, %v279_v41  ;;  %v269_v47 = vadd.f32 0.05243302, %v268_v44 }
  0xad   : > { %v281_v45 = vmul.f32 %v280_v43, %v263_v27  ;;  %v270_v50 = vmul.f32 %v269_v47, %v263_v27 }
  0xaf   : > { %v282_v46 = vadd.f32 0.4994258, %v281_v45  ;;  %v271_v51 = vadd.f32 0.18741608, %v270_v50 }
  0xb1   : > { %v283_v48 = vmul.f32 %v282_v46, %v263_v27  ;;  %v272_v53 = vmul.f32 %v271_v51, %v263_v27 }
  0xb3   : > { %v284_v49 = vadd.f32 1.0, %v283_v48  ;;  %v273_v57 = vadd.f32 1.1283791, %v272_v53 }
  0xb5   : > { %476 = vrcp.f32 %v284_v49  ;;  %v296_v56 = vand.u32 2147483648, %v284_v49  ;;  %v294_v59 = vand.u32 2147483647, %v284_v49  ;;  %vm290_vm3 = vweird.f32 %v284_v49 }
  0xb6   : > { %v274_v62 = vmul.f32 %v273_v57, %v261_v23 }
  0xb7   : > { %v297_v61 = vor.u32 1.1754944e-38, %v296_v56  ;;  %vm295_vm5 = vcmp.eq.f32.partialorder %v294_v59, 8.507059e+37 }
  0xbb   : > { %v477_v52 = vpop.eup %476 }
  0xbc   : > { %v286_v54 = vmul.f32 %v477_v52, %v284_v49  ;;  %vm291_vm2 = vweird.f32 %v477_v52 }
  0xbd   : > { %vm292_vm4 = vmor %vm290_vm3, %vm291_vm2 }
  0xbe   : > { %v287_v55 = vsub.f32 1.0, %v286_v54 }
  0xc0   : > { %v288_v58 = vmul.f32 %v477_v52, %v287_v55 }
  0xc2   : > { %v289_v60 = vadd.f32 %v477_v52, %v288_v58 }
  0xc4   : > { %v293_v63 = vsel %vm292_vm4, %v477_v52, %v289_v60 }
  0xc5   : > { %v298_v0 = vsel %vm295_vm5, %v297_v61, %v293_v63 }
  0xc6   : > { %v299_v1 = vmul.f32 %v298_v0, %v274_v62 }
  0xc8   : > { %v427_v2 = vclamps-f32 %v299_v1, 1.0 }
  0xca   : > { %v302_v4 = vadd.f32 1.0, %v427_v2 }
  0xcc   : > { %v303_v5 = vmul.f32 %v302_v4, %v253_v3 }
  0xce   : > { %340 = vmatmul.f32.vlgmr.msra.gmra.mxu1 %v303_v5 }
 0x14b   : > { %v341_v7 = vpop.f32.mrf.mxu1 }
 0x14c   : > { %v342_v8 = vadd.f32 %v473_v6, %v341_v7 }
 0x14e   : > { %344 = vst.msk [vmem:[%s215_s12] sm:$0xff] %vm229_vm0, %v342_v8 }
 0x14f   : > { %505 = shalt.err (!%p502_p3)
}
 0x150   : > { %432 = dma.vmem_to_hbm [thread:$0]  (%p611_p5), %s359_s13, 128, %s361_s14, %s346_s15  }
 0x151 PF: > { %p438_p4 = scmp.ge.s32.totalorder %s540_s21, 2  ;;  %s372_s26 = sand.u32 1, %s528_s18  }
 0x152   : > { %s373_s7 = scalar_lea.sflag [#allocation3], %s372_s26 }
 0x153   : > { %p435_p7 = pnand %p438_p4, %p615_p6 }
 0x155   : > { %p436_p8 = pneg %p435_p7 }
 0x157   : > { %523 = dma.done.wait (%p436_p8), %s373_s7, 128  }
 0x158   : > { %525 = vsyncadd (%p436_p8), %s373_s7, 4294967168  ;;  %p15_p9 = scmp.ge.s32.totalorder %s598_s24, 4   ;;  %s734_s18 = smov %s532_s19 }
 0x159   : > { %s735_s19 = smov %s536_s20  ;;  %s736_s20 = smov %s609_s27 }
 0x15a   : > { %s737_s21 = smov %s598_s24  ;;  %17 = sbr.rel (!%p15_p9) target bundleno = 3 (0x3), region = 75 }
 0x15f   :  { %379 = vsyncpa [#allocation3], 1 }
 0x160   :  { %381 = vsyncpa [#allocation3 + $0x1], 1 }

</bundles_post_ra>
